<compile_context>
chip_gen: v6e
topology: v6e:2x2x1
jax: 0.10.0
libtpu: 0.0.40
codegen_flags: <defaults>
</compile_context>

<pallas_src>
import functools

import jax
import jax.numpy as jnp
from jax import lax
from jax.experimental import pallas as pl
from jax.experimental.pallas import tpu as pltpu


def _sigmoid(x):
    # tanh-form sigmoid: single EUP transcendental per element (vs exp + recip).
    return 0.5 * (jnp.tanh(0.5 * x) + 1.0)


def _pick_time_block(msl, cap=32):
    tb = min(msl, cap)
    while msl % tb:
        tb -= 1
    return tb


# ---------------------------------------------------------------------------
# Kernel 1 (parallel): x_proj = emb @ W_ih^T + (b_ih + b_hh), all timesteps.
# ---------------------------------------------------------------------------
def _proj_kernel(x_ref, w_ref, b_ref, o_ref):
    o_ref[...] = (
        jnp.dot(x_ref[...], w_ref[...], preferred_element_type=jnp.float32)
        + b_ref[...]
    ).astype(o_ref.dtype)


def _input_projection(emb2d, w_ih_t, bias, *, row_block=256):
    """emb2d: (M, E) f32, w_ih_t: (E, 4H), bias: (1, 4H)  ->  (M, 4H) f32."""
    M, E = emb2d.shape
    G = w_ih_t.shape[1]
    rb = min(M, row_block)                       # rb == M (full) or a multiple of 8
    m_pad = pl.cdiv(M, rb) * rb
    if m_pad != M:
        emb2d = jnp.pad(emb2d, ((0, m_pad - M), (0, 0)))

    out = pl.pallas_call(
        _proj_kernel,
        out_shape=jax.ShapeDtypeStruct((m_pad, G), jnp.float32),
        grid_spec=pltpu.PrefetchScalarGridSpec(
            num_scalar_prefetch=0,
            grid=(m_pad // rb,),
            in_specs=[
                pl.BlockSpec((rb, E), lambda i: (i, 0)),
                pl.BlockSpec((E, G), lambda i: (0, 0)),   # grid-invariant, single fetch
                pl.BlockSpec((1, G), lambda i: (0, 0)),
            ],
            out_specs=pl.BlockSpec((rb, G), lambda i: (i, 0)),
        ),
        compiler_params=pltpu.CompilerParams(
            dimension_semantics=("parallel",),
            vmem_limit_bytes=32 * 1024 * 1024,
        ),
    )(emb2d, w_ih_t, bias)
    return out[:M]


# ---------------------------------------------------------------------------
# Kernel 2 (sequential): LSTM recurrence, T_BLOCK timesteps per grid step.
# ---------------------------------------------------------------------------
def _lstm_recurrence_kernel(xproj_ref, whh_ref, out_ref, hN_ref, cN_ref,
                            h_sc, c_sc, *, t_block, hidden):
    """
    xproj_ref : (T, bs_p, 4H)  precomputed x @ W_ih^T + bias for this block
    whh_ref   : (H, 4H)        pre-transposed hidden-to-hidden weights
    out_ref   : (T, bs_p, H)   per-step hidden outputs for this block
    hN/cN     : (1, bs_p, H)   final states (resident, written on last step only)
    h_sc/c_sc : (bs_p, H)      recurrent state carried across grid steps
    """
    H = hidden

    @pl.when(pl.program_id(0) == 0)
    def _():
        h_sc[...] = jnp.zeros_like(h_sc)
        c_sc[...] = jnp.zeros_like(c_sc)

    whh = whh_ref[...]                       # load grid-invariant weights once

    def step(t, carry):
        h_prev, c_prev = carry
        # only the truly sequential matmul stays inside the recurrence
        gates = xproj_ref[t] + jnp.dot(h_prev, whh,
                                       preferred_element_type=jnp.float32)
        i_g = _sigmoid(gates[:, 0 * H:1 * H])
        f_g = _sigmoid(gates[:, 1 * H:2 * H])
        g_g = jnp.tanh(gates[:, 2 * H:3 * H])
        o_g = _sigmoid(gates[:, 3 * H:4 * H])
        c_new = f_g * c_prev + i_g * g_g
        h_new = o_g * jnp.tanh(c_new)
        out_ref[t] = h_new.astype(out_ref.dtype)
        return h_new, c_new

    h_f, c_f = lax.fori_loop(0, t_block, step, (h_sc[...], c_sc[...]),
                             unroll=True)
    h_sc[...] = h_f
    c_sc[...] = c_f

    @pl.when(pl.program_id(0) == pl.num_programs(0) - 1)
    def _():
        hN_ref[0] = h_f.astype(hN_ref.dtype)
        cN_ref[0] = c_f.astype(cN_ref.dtype)


def lstm_encoder_forward(x, emb_table, w_ih, w_hh, b_ih, b_hh,
                         *, time_block_cap=32):
    """x: (msl, bs) int32 token ids. Returns (out, h_n, c_n)."""
    msl, bs = x.shape
    emb_dim = emb_table.shape[1]
    hidden = w_hh.shape[1]
    gates_dim = 4 * hidden

    # --- glue (plain JAX): embedding gather; dropout is identity in eval ---
    emb = jnp.take(emb_table, x, axis=0).astype(jnp.float32)    # (msl, bs, E)
    # TODO(synk): training-mode dropout (p=0.5) would need pltpu.prng_random_bits
    # masking; eval-mode dropout is the identity, so it is omitted here.

    # Pad batch to a multiple of 8 so the sublane dimension of every block is full.
    bs_p = ((bs + 7) // 8) * 8
    if bs_p != bs:
        emb = jnp.pad(emb, ((0, 0), (0, bs_p - bs), (0, 0)))

    # Pre-transpose weights once; fold the two biases together.
    w_ih_t = jnp.asarray(w_ih, jnp.float32).T                  # (E, 4H)
    w_hh_t = jnp.asarray(w_hh, jnp.float32).T                  # (H, 4H)
    bias = (b_ih + b_hh).astype(jnp.float32).reshape(1, gates_dim)
    # TODO(synk): for large H, cast w_hh_t / activations to bf16 for the MXU
    # (f32 accumulate) to cut VMEM and boost throughput; kept f32 here so the
    # self-test tolerance stays tight.

    # --- kernel 1: hoisted input projection (one big parallel matmul) ---
    x_proj = _input_projection(emb.reshape(msl * bs_p, emb_dim), w_ih_t, bias)
    x_proj = x_proj.reshape(msl, bs_p, gates_dim)

    # --- kernel 2: sequential recurrence, blocked over time ---
    t_block = _pick_time_block(msl, time_block_cap)
    kernel = functools.partial(_lstm_recurrence_kernel,
                               t_block=t_block, hidden=hidden)

    out, h_n, c_n = pl.pallas_call(
        kernel,
        out_shape=(
            jax.ShapeDtypeStruct((msl, bs_p, hidden), jnp.float32),
            jax.ShapeDtypeStruct((1, bs_p, hidden), jnp.float32),
            jax.ShapeDtypeStruct((1, bs_p, hidden), jnp.float32),
        ),
        grid_spec=pltpu.PrefetchScalarGridSpec(
            num_scalar_prefetch=0,
            grid=(msl // t_block,),
            in_specs=[
                pl.BlockSpec((t_block, bs_p, gates_dim), lambda i: (i, 0, 0)),
                pl.BlockSpec((hidden, gates_dim), lambda i: (0, 0)),  # invariant
            ],
            out_specs=[
                pl.BlockSpec((t_block, bs_p, hidden), lambda i: (i, 0, 0)),
                pl.BlockSpec((1, bs_p, hidden), lambda i: (0, 0, 0)),
                pl.BlockSpec((1, bs_p, hidden), lambda i: (0, 0, 0)),
            ],
            scratch_shapes=[
                pltpu.VMEM((bs_p, hidden), jnp.float32),
                pltpu.VMEM((bs_p, hidden), jnp.float32),
            ],
        ),
        compiler_params=pltpu.CompilerParams(
            dimension_semantics=("arbitrary",),      # time recurrence is sequential
            vmem_limit_bytes=32 * 1024 * 1024,       # explicit, fits v5e/v6e/v7x
        ),
    )(x_proj, w_hh_t)

    # Strip batch padding.
    return out[:, :bs, :], h_n[:, :bs, :], c_n[:, :bs, :]


def _reference_lstm(x, emb_table, w_ih, w_hh, b_ih, b_hh):
    """Pure-JAX reference mirroring nn.LSTM semantics (single layer, h0=c0=0)."""
    msl, bs = x.shape
    hidden = w_hh.shape[1]
    emb = jnp.take(emb_table, x, axis=0)

    def step(carry, x_t):
        h, c = carry
        gates = x_t @ w_ih.T + h @ w_hh.T + b_ih + b_hh
        i = jax.nn.sigmoid(gates[:, 0 * hidden:1 * hidden])
        f = jax.nn.sigmoid(gates[:, 1 * hidden:2 * hidden])
        g = jnp.tanh(gates[:, 2 * hidden:3 * hidden])
        o = jax.nn.sigmoid(gates[:, 3 * hidden:4 * hidden])
        c = f * c + i * g
        h = o * jnp.tanh(c)
        return (h, c), h

    init = (jnp.zeros((bs, hidden), jnp.float32),
            jnp.zeros((bs, hidden), jnp.float32))
    (h_n, c_n), outs = jax.lax.scan(step, init, emb)
    return outs, h_n[None], c_n[None]


if __name__ == "__main__":
    vocab_sz, emb_dim, hidden_dim = 50, 16, 32
    msl, bs = 8, 4

    key = jax.random.PRNGKey(0)
    k_emb, k_wih, k_whh, k_bih, k_bhh, k_x = jax.random.split(key, 6)

    emb_table = jax.random.normal(k_emb, (vocab_sz, emb_dim), jnp.float32)
    bound = 1.0 / jnp.sqrt(hidden_dim)
    w_ih = jax.random.uniform(k_wih, (4 * hidden_dim, emb_dim), jnp.float32, -bound, bound)
    w_hh = jax.random.uniform(k_whh, (4 * hidden_dim, hidden_dim), jnp.float32, -bound, bound)
    b_ih = jax.random.uniform(k_bih, (4 * hidden_dim,), jnp.float32, -bound, bound)
    b_hh = jax.random.uniform(k_bhh, (4 * hidden_dim,), jnp.float32, -bound, bound)

    x = jax.random.randint(k_x, (msl, bs), 0, vocab_sz, jnp.int32)

    out, h_n, c_n = lstm_encoder_forward(x, emb_table, w_ih, w_hh, b_ih, b_hh)
    jax.block_until_ready((out, h_n, c_n))

    out_r, h_r, c_r = _reference_lstm(x, emb_table, w_ih, w_hh, b_ih, b_hh)
    assert out.shape == (msl, bs, hidden_dim)
    assert h_n.shape == (1, bs, hidden_dim) and c_n.shape == (1, bs, hidden_dim)
    assert jnp.allclose(out, out_r, atol=1e-4, rtol=1e-4), \
        float(jnp.max(jnp.abs(out - out_r)))
    assert jnp.allclose(h_n, h_r, atol=1e-4, rtol=1e-4)
    assert jnp.allclose(c_n, c_r, atol=1e-4, rtol=1e-4)

    print("KERNEL_OK")
</pallas_src>

<mosaic_0001>
module attributes {stable_mosaic.version = 11 : i64} {
  func.func @_proj_kernel(%arg0: i32, %arg1: memref<64x16xf32, #tpu.memory_space<vmem>>, %arg2: memref<16x128xf32, #tpu.memory_space<vmem>>, %arg3: memref<1x128xf32, #tpu.memory_space<vmem>>, %arg4: memref<64x128xf32, #tpu.memory_space<vmem>>) attributes {dimension_semantics = [#tpu.dimension_semantics<parallel>], iteration_bounds = array<i64: 1>, scalar_prefetch = 0 : i64, scratch_operands = 0 : i64, tpu.core_type = #tpu.core_type<tc>, window_params = [{transform_indices = @transform_0, window_bounds = array<i64: 64, 16>}, {pipeline_mode = #tpu.pipeline_mode<synchronous>, transform_indices = @transform_1, window_bounds = array<i64: 16, 128>}, {pipeline_mode = #tpu.pipeline_mode<synchronous>, transform_indices = @transform_2, window_bounds = array<i64: 1, 128>}, {transform_indices = @transform_3, window_bounds = array<i64: 64, 128>}]} {
    %c0 = arith.constant 0 : index
    %c0_0 = arith.constant 0 : index
    %0 = vector.load %arg1[%c0, %c0_0] : memref<64x16xf32, #tpu.memory_space<vmem>>, vector<64x16xf32>
    %c0_1 = arith.constant 0 : index
    %c0_2 = arith.constant 0 : index
    %1 = vector.load %arg2[%c0_1, %c0_2] : memref<16x128xf32, #tpu.memory_space<vmem>>, vector<16x128xf32>
    %cst = arith.constant dense<0.000000e+00> : vector<64x128xf32>
    %2 = tpu.matmul %0, %1, %cst {dimension_numbers = #tpu.dot_dimension_numbers<[1], [0], [0], [1], [0, 0, 1, 1], [], []>} : vector<64x16xf32>, vector<16x128xf32>, vector<64x128xf32> -> vector<64x128xf32>
    %c0_3 = arith.constant 0 : index
    %c0_4 = arith.constant 0 : index
    %3 = vector.load %arg3[%c0_3, %c0_4] : memref<1x128xf32, #tpu.memory_space<vmem>>, vector<1x128xf32>
    %4 = vector.broadcast %3 : vector<1x128xf32> to vector<64x128xf32>
    %5 = arith.addf %2, %4 : vector<64x128xf32>
    %c0_5 = arith.constant 0 : index
    %c0_6 = arith.constant 0 : index
    %6 = vector.load %arg4[%c0_5, %c0_6] : memref<64x128xf32, #tpu.memory_space<vmem>>, vector<64x128xf32>
    tpu.vector_store %arg4[%c0_5, %c0_6], %5 {strides = array<i32>} : memref<64x128xf32, #tpu.memory_space<vmem>>, vector<64x128xf32>,
    return
  }
  func.func @transform_0(%arg0: i32) -> (i32, i32) {
    %c0_i32 = arith.constant 0 : i32
    %c0_i32_0 = arith.constant 0 : i32
    return %arg0, %c0_i32 : i32, i32
  }
  func.func @transform_1(%arg0: i32) -> (i32, i32) {
    %c0_i32 = arith.constant 0 : i32
    %c0_i32_0 = arith.constant 0 : i32
    %c0_i32_1 = arith.constant 0 : i32
    return %c0_i32, %c0_i32_0 : i32, i32
  }
  func.func @transform_2(%arg0: i32) -> (i32, i32) {
    %c0_i32 = arith.constant 0 : i32
    %c0_i32_0 = arith.constant 0 : i32
    %c0_i32_1 = arith.constant 0 : i32
    return %c0_i32, %c0_i32_0 : i32, i32
  }
  func.func @transform_3(%arg0: i32) -> (i32, i32) {
    %c0_i32 = arith.constant 0 : i32
    %c0_i32_0 = arith.constant 0 : i32
    return %arg0, %c0_i32 : i32, i32
  }
}

</mosaic_0001>

<bundles_post_ra>
// kernel: tpu_custom_call.1
= control target key start
LH: loop header
LB: loop body
LE: loop exit
PB: predicated region body
PF: predicated region fallthrough
CT: control target
= control target key end

     0   :  { %vm32_vm0 = vcmask 130048   ;;  %s317_s0 = inlined_call_operand.vmem [shape: f32[64,16], index: 0, kind: input, shape index: {}]   ;;  %s318_s1 = inlined_call_operand.vmem [shape: f32[16,128], index: 1, kind: input, shape index: {}]   ;;  %s319_s2 = inlined_call_operand.vmem [shape: f32[1,128], index: 2, kind: input, shape index: {}]   ;;  %s320_s3 = inlined_call_operand.hbm [shape: f32[64,128], index: 3, kind: output, shape index: {}]  }
   0x1   :  { %v24_v0 = vld [vmem:[%s318_s1 + $0x8] sm:$0xff]  ;;  %v23_v1 = vld [vmem:[%s318_s1] sm:$0xff] }
   0x2   :  { %205 = vmatprep.subr.mxu0 %v24_v0  ;;  %221 = vmatprep.subr.mxu1 %v24_v0  ;;  %v15_v2 = vld [vmem:[%s317_s0] sm:$0xff]  ;;  %v16_v4 = vld [vmem:[%s317_s0 + $0x8] sm:$0xff] }
   0x3   :  { %206 = vmatpush3.msra.mxu0 %v24_v0  ;;  %223 = vmatpush3.msra.mxu1 %v24_v0  ;;  %v19_v3 = vld [vmem:[%s317_s0 + $0x20] sm:$0xff]  ;;  %v20_v5 = vld [vmem:[%s317_s0 + $0x28] sm:$0xff] }
   0x4   :  { %207 = vmatprep.subr.mxu0 %v23_v1  ;;  %222 = vmatprep.subr.mxu1 %v23_v1 }
   0x5   :  { %8 = vsyncpa [#allocation3], 0  ;;  %208 = vmatpush3.msra.mxu0 %v23_v1  ;;  %224 = vmatpush3.msra.mxu1 %v23_v1  ;;  %v17_v6 = vld [vmem:[%s317_s0 + $0x10] sm:$0xff]  ;;  %v18_v8 = vld [vmem:[%s317_s0 + $0x18] sm:$0xff]  ;;  %s250_s6 = smov [#allocation2]  }
   0x6   :  { %v21_v7 = vld [vmem:[%s317_s0 + $0x30] sm:$0xff]  ;;  %209 = vmatprep.mubr.msk.f32.mxu0 %vm32_vm0, %v15_v2  ;;  %215 = vmatprep.mubr.msk.f32.mxu1 %vm32_vm0, %v19_v3  ;;  %v22_v9 = vld [vmem:[%s317_s0 + $0x38] sm:$0xff]  ;;  %v186_v10 = vld [vmem:[%s319_s2] ss:$0 sm:$0xff]  ;;  %s175_s0 = sshll.u32 %s250_s6, 4  ;;  %s176_s0 = int_to_ptr.vmem [resolvable:$true] %s175_s0 }
   0x7   :  { %210 = vmatmul.mubr.msk.f32.vlgmr.msra.gmra.mxu0 %vm32_vm0, %v16_v4  ;;  %216 = vmatmul.mubr.msk.f32.vlgmr.msra.gmra.mxu1 %vm32_vm0, %v20_v5  ;;  %s228_s2 = scalar_lea.vmem %s176_s0, 1024  ;;  %p233_p1 = scmp.lt.s32.totalorder %s176_s0, %s176_s0 }
   0x8   :  { %212 = vmatprep.mubr.msk.f32.mxu0 %vm32_vm0, %v17_v6  ;;  %218 = vmatprep.mubr.msk.f32.mxu1 %vm32_vm0, %v21_v7  ;;  %p229_p0 = scmp.ne.s32.totalorder %s176_s0, %s228_s2  ;;  %p234_p2 = scmp.lt.s32.totalorder %s228_s2, %s228_s2 }
   0xa   :  { %p235_p3 = por %p234_p2, %p233_p1 }
   0xb   :  { %213 = vmatmul.mubr.msk.f32.gmra.mxu0 %vm32_vm0, %v18_v8  ;;  %219 = vmatmul.mubr.msk.f32.gmra.mxu1 %vm32_vm0, %v22_v9 }
   0xc   :  { %p236_p4 = pnand %p235_p3, %p229_p0 }
  0xc7   :  { %v211_v11 = vpop.f32.mrf.mxu0  ;;  %v217_v12 = vpop.f32.mrf.mxu1 }
  0xc8   :  { %v129_v13 = vadd.f32 %v211_v11, %v186_v10  ;;  %v149_v14 = vadd.f32 %v217_v12, %v186_v10 }
  0xc9   :  { %v123_v15 = vpop.f32.mrf.mxu0  ;;  %v143_v16 = vpop.f32.mrf.mxu1 }
  0xca   :  { %163 = vst [vmem:[#allocation2 + $0x8] sm:$0xff] %v129_v13  ;;  %167 = vst [vmem:[#allocation2 + $0x28] sm:$0xff] %v149_v14  ;;  %v124_v17 = vadd.f32 %v186_v10, %v123_v15  ;;  %v144_v18 = vadd.f32 %v186_v10, %v143_v16 }
  0xcb   :  { %v214_v19 = vpop.f32.mrf.mxu0  ;;  %v220_v20 = vpop.f32.mrf.mxu1 }
  0xcc   :  { %162 = vst [vmem:[#allocation2] sm:$0xff] %v124_v17  ;;  %166 = vst [vmem:[#allocation2 + $0x20] sm:$0xff] %v144_v18  ;;  %v139_v21 = vadd.f32 %v214_v19, %v186_v10  ;;  %v159_v22 = vadd.f32 %v220_v20, %v186_v10 }
  0xcd   :  { %v133_v23 = vpop.f32.mrf.mxu0  ;;  %v153_v24 = vpop.f32.mrf.mxu1 }
  0xce   :  { %165 = vst [vmem:[#allocation2 + $0x18] sm:$0xff] %v139_v21  ;;  %169 = vst [vmem:[#allocation2 + $0x38] sm:$0xff] %v159_v22  ;;  %v134_v25 = vadd.f32 %v186_v10, %v133_v23  ;;  %v154_v26 = vadd.f32 %v186_v10, %v153_v24 }
  0xd0   :  { %164 = vst [vmem:[#allocation2 + $0x10] sm:$0xff] %v134_v25  ;;  %168 = vst [vmem:[#allocation2 + $0x30] sm:$0xff] %v154_v26 }
  0xd1   :  { %239 = shalt.err (!%p236_p4)
}
  0xd2   :  { %s251_s7 = smov 128   ;;  %s252_s8 = smov 8  }
  0xd3   :  { %181 = dma.vmem_to_hbm [thread:$0]  %s176_s0, 1024, %s320_s3, [#allocation3], %s251_s7, %s251_s7, %s252_s8  }
  0xd4   :  { %248 = dma.done.wait [#allocation3], 1024  }
  0xd5   :  { %249 = vsyncadd [#allocation3], 4294966272 }
  0xd6   :  { %185 = vsyncpa [#allocation3], 1 }

</bundles_post_ra>
